<compile_context>
chip_gen: v5e
topology: v5e:2x2
jax: 0.10.0
libtpu: 0.0.40
codegen_flags: <defaults>
</compile_context>

<pallas_src>
import math

import jax
import jax.numpy as jnp
from jax.experimental import pallas as pl
from jax.experimental.pallas import tpu as pltpu

_HALF_LOG_2PI = 0.5 * math.log(2.0 * math.pi)


def _round_up(n, m):
    return ((n + m - 1) // m) * m


def _gaussian_prob_kernel(
    x_ref,        # [TILE_B, D_in_pad]        compute dtype (e.g. bf16)
    w_ref,        # [D_in_pad, 2*D_out_pad]   fused (mean | log_std) weights
    b_ref,        # [1, 2*D_out_pad]          fused bias, f32
    eps_ref,      # [TILE_B, D_out_pad]       standard-normal noise, f32
    mean_ref,     # out: [TILE_B, D_out_pad]
    logstd_ref,   # out: [TILE_B, D_out_pad]
    sample_ref,   # out: [TILE_B, D_out_pad]
    logp_ref,     # out: [TILE_B, D_out_pad]
):
    # Single fused MXU matmul for both heads, f32 accumulation.
    y = jnp.dot(x_ref[...], w_ref[...], preferred_element_type=jnp.float32)
    y = y + b_ref[...]                       # implicit [1, n_pad] broadcast, f32

    d = mean_ref.shape[-1]                   # D_out_pad (multiple of 128 -> aligned split)
    mean = y[:, :d]
    log_std = y[:, d:]
    # TODO(synk): no log_std clamping — matches the reference module semantics;
    # many Gaussian heads clamp log_std to e.g. [-20, 2].
    std = jnp.exp(log_std)

    eps = eps_ref[...]
    # dsample: differentiable reparameterized sample.
    sample = mean + std * eps
    # Normal(mean, std).log_prob(sample): z == eps by construction -> no divide.
    logp = -0.5 * (eps * eps) - log_std - _HALF_LOG_2PI

    mean_ref[...] = mean.astype(mean_ref.dtype)
    logstd_ref[...] = log_std.astype(logstd_ref.dtype)
    sample_ref[...] = sample.astype(sample_ref.dtype)
    logp_ref[...] = logp.astype(logp_ref.dtype)


def fuse_gaussian_params(w_mu, b_mu, w_ls, b_ls, *, compute_dtype=jnp.bfloat16):
    """Fuse + zero-pad the two Linear heads ONCE.  Cache the result across calls."""
    D_in, D_out = w_mu.shape
    d_in_pad = _round_up(D_in, 128)       # lane-dense x tile, full MXU K passes
    d_out_pad = _round_up(D_out, 128)     # lane-dense outputs (unmasked stores)
    n_pad = 2 * d_out_pad

    w = jnp.zeros((d_in_pad, n_pad), compute_dtype)
    w = w.at[:D_in, :D_out].set(w_mu.astype(compute_dtype))
    w = w.at[:D_in, d_out_pad:d_out_pad + D_out].set(w_ls.astype(compute_dtype))

    b = jnp.zeros((1, n_pad), jnp.float32)
    b = b.at[0, :D_out].set(b_mu.reshape(-1).astype(jnp.float32))
    b = b.at[0, d_out_pad:d_out_pad + D_out].set(b_ls.reshape(-1).astype(jnp.float32))
    return w, b


def _vmem_estimate(tile_b, d_in_pad, d_out_pad, itm_c, itm_o):
    """Per-step VMEM footprint: pipelined I/O blocks + resident weights + intermediates."""
    n_pad = 2 * d_out_pad
    pipelined = 2 * tile_b * (d_in_pad * itm_c          # x (double-buffered)
                              + d_out_pad * 4           # eps (f32)
                              + 4 * d_out_pad * itm_o)  # 4 outputs
    resident = 2 * (d_in_pad * n_pad * itm_c + n_pad * 4)       # fused weight + bias
    inter = tile_b * n_pad * 4 + 6 * tile_b * d_out_pad * 4     # y + elementwise temps
    return pipelined + resident + inter


def gaussian_probabilistic_forward(
    x, fused_w, fused_b, eps, *, d_out,
    tile_b=512, compute_dtype=jnp.bfloat16, out_dtype=jnp.float32,
):
    """Returns (mean, log_std, sample, log_prob), each [B, d_out] in out_dtype."""
    B, D_in = x.shape
    d_in_pad, n_pad = fused_w.shape
    d_out_pad = n_pad // 2
    assert D_in <= d_in_pad and d_out <= d_out_pad

    itm_c = jnp.dtype(compute_dtype).itemsize
    itm_o = jnp.dtype(out_dtype).itemsize

    # Generation-aware VMEM budget (v5e/v6e: 128 MiB, v7x: 64 MiB per TC).
    try:
        phys_vmem = int(pltpu.get_tpu_info().vmem_capacity_bytes)
    except Exception:  # CPU / interpret environments or older runtimes
        phys_vmem = 64 * 1024 * 1024
    vmem_cap = min((phys_vmem * 3) // 4, 100 * 1024 * 1024)

    # Batch tile: lane/MXU-friendly default, single sublane-clean tile for tiny B,
    # auto-shrunk until the per-step footprint (incl. intermediates) fits the cap.
    if B <= tile_b:
        tile_b = _round_up(B, 16)
    while tile_b > 16 and _vmem_estimate(tile_b, d_in_pad, d_out_pad, itm_c, itm_o) > vmem_cap:
        tile_b //= 2
    b_pad = _round_up(B, tile_b)
    num_tiles = b_pad // tile_b

    # Single-pass pad + cast of x directly in the compute dtype (skipped when aligned).
    if b_pad == B and D_in == d_in_pad and x.dtype == compute_dtype:
        x_p = x
    else:
        x_p = jnp.pad(x.astype(compute_dtype), ((0, b_pad - B), (0, d_in_pad - D_in)))

    # TODO(synk): eps is an HBM input stream; in-kernel pltpu.prng_seed/stateful_normal
    # would remove it on real TPU but does not lower in CPU/interpret environments.
    if eps.shape == (b_pad, d_out_pad) and eps.dtype == jnp.float32:
        eps_p = eps
    else:
        eps_p = jnp.pad(eps.astype(jnp.float32),
                        ((0, b_pad - eps.shape[0]), (0, d_out_pad - eps.shape[1])))

    vmem_est = _vmem_estimate(tile_b, d_in_pad, d_out_pad, itm_c, itm_o)
    vmem_limit = int(min(vmem_cap, max(vmem_est + (8 << 20), 32 << 20)))

    # TODO(synk): for very large d_out on v7x (64 MiB VMEM) add a second "parallel"
    # grid axis tiling the output (N) columns instead of one fused weight block,
    # and mark the grid-invariant weight/bias specs pipeline_mode=pl.Buffered(1).
    grid_spec = pltpu.PrefetchScalarGridSpec(
        num_scalar_prefetch=0,
        grid=(num_tiles,),
        in_specs=[
            pl.BlockSpec((tile_b, d_in_pad), lambda i: (i, 0)),
            pl.BlockSpec((d_in_pad, n_pad), lambda i: (0, 0)),
            pl.BlockSpec((1, n_pad), lambda i: (0, 0)),
            pl.BlockSpec((tile_b, d_out_pad), lambda i: (i, 0)),
        ],
        out_specs=tuple(
            pl.BlockSpec((tile_b, d_out_pad), lambda i: (i, 0)) for _ in range(4)
        ),
    )
    out_shape = tuple(
        jax.ShapeDtypeStruct((b_pad, d_out_pad), out_dtype) for _ in range(4)
    )

    outs = pl.pallas_call(
        _gaussian_prob_kernel,
        grid_spec=grid_spec,
        out_shape=out_shape,
        compiler_params=pltpu.CompilerParams(
            dimension_semantics=("parallel",),   # 2-TC sharding on v7x
            vmem_limit_bytes=vmem_limit,
        ),
    )(x_p, fused_w, fused_b, eps_p)

    if b_pad == B and d_out_pad == d_out:
        return outs                               # aligned: no un-pad copies
    s = (slice(0, B), slice(0, d_out))
    return tuple(o[s] for o in outs)


def _reference(x, w_mu, b_mu, w_ls, b_ls, eps, compute_dtype=jnp.bfloat16):
    """Pure-JAX reference with the same bf16 input/weight rounding as the kernel."""
    xc = x.astype(compute_dtype).astype(jnp.float32)
    wm = w_mu.astype(compute_dtype).astype(jnp.float32)
    wl = w_ls.astype(compute_dtype).astype(jnp.float32)
    mean = xc @ wm + b_mu.reshape(1, -1)
    log_std = xc @ wl + b_ls.reshape(1, -1)
    std = jnp.exp(log_std)
    sample = mean + std * eps
    logp = -0.5 * (eps * eps) - log_std - _HALF_LOG_2PI
    return mean, log_std, sample, logp


if __name__ == "__main__":
    B = 8          # batch
    D_IN = 32      # input_dim
    D_OUT = 16     # output_dim

    key = jax.random.PRNGKey(0)
    k_x, k_wmu, k_bmu, k_wls, k_bls, k_eps = jax.random.split(key, 6)

    # Deterministic synthetic parameters (block = Linear(D_IN, 2*D_OUT)).
    x = jax.random.normal(k_x, (B, D_IN), dtype=jnp.float32)
    scale = 1.0 / math.sqrt(D_IN)
    w_mu = jax.random.uniform(k_wmu, (D_IN, D_OUT), jnp.float32, -scale, scale)
    b_mu = jax.random.uniform(k_bmu, (D_OUT,), jnp.float32, -scale, scale)
    w_ls = jax.random.uniform(k_wls, (D_IN, D_OUT), jnp.float32, -scale, scale)
    b_ls = jax.random.uniform(k_bls, (D_OUT,), jnp.float32, -scale, scale)
    eps = jax.random.normal(k_eps, (B, D_OUT), dtype=jnp.float32)

    # Fuse + pad the parameters ONCE (cache across forward calls).
    fused_w, fused_b = fuse_gaussian_params(w_mu, b_mu, w_ls, b_ls)

    mean, log_std, sample, logp = jax.block_until_ready(
        gaussian_probabilistic_forward(x, fused_w, fused_b, eps, d_out=D_OUT)
    )

    for a in (mean, log_std, sample, logp):
        assert a.shape == (B, D_OUT) and a.dtype == jnp.float32

    mean_r, logstd_r, sample_r, logp_r = _reference(x, w_mu, b_mu, w_ls, b_ls, eps)

    # 1) Deterministic heads (forward()) vs. pure-JAX reference.
    assert jnp.allclose(mean, mean_r, atol=1e-4, rtol=1e-4)
    assert jnp.allclose(log_std, logstd_r, atol=1e-4, rtol=1e-4)

    # 2) Reparameterized sample (dsample) and its Normal log-density (log_prob).
    assert jnp.allclose(sample, sample_r, atol=1e-3, rtol=1e-3)
    assert jnp.allclose(logp, logp_r, atol=1e-3, rtol=1e-3)
    assert jnp.all(jnp.isfinite(sample)) and jnp.all(jnp.isfinite(logp))

    print("KERNEL_OK")
</pallas_src>

<mosaic_0001>
module attributes {stable_mosaic.version = 11 : i64} {
  func.func @_gaussian_prob_kernel(%arg0: i32, %arg1: memref<16x128xbf16, #tpu.memory_space<vmem>>, %arg2: memref<128x256xbf16, #tpu.memory_space<vmem>>, %arg3: memref<1x256xf32, #tpu.memory_space<vmem>>, %arg4: memref<16x128xf32, #tpu.memory_space<vmem>>, %arg5: memref<16x128xf32, #tpu.memory_space<vmem>>, %arg6: memref<16x128xf32, #tpu.memory_space<vmem>>, %arg7: memref<16x128xf32, #tpu.memory_space<vmem>>, %arg8: memref<16x128xf32, #tpu.memory_space<vmem>>) attributes {dimension_semantics = [#tpu.dimension_semantics<parallel>], iteration_bounds = array<i64: 1>, scalar_prefetch = 0 : i64, scratch_operands = 0 : i64, tpu.core_type = #tpu.core_type<tc>, window_params = [{transform_indices = @transform_0, window_bounds = array<i64: 16, 128>}, {pipeline_mode = #tpu.pipeline_mode<synchronous>, transform_indices = @transform_1, window_bounds = array<i64: 128, 256>}, {pipeline_mode = #tpu.pipeline_mode<synchronous>, transform_indices = @transform_2, window_bounds = array<i64: 1, 256>}, {transform_indices = @transform_3, window_bounds = array<i64: 16, 128>}, {transform_indices = @transform_4, window_bounds = array<i64: 16, 128>}, {transform_indices = @transform_5, window_bounds = array<i64: 16, 128>}, {transform_indices = @transform_6, window_bounds = array<i64: 16, 128>}, {transform_indices = @transform_7, window_bounds = array<i64: 16, 128>}]} {
    %c0 = arith.constant 0 : index
    %c0_0 = arith.constant 0 : index
    %0 = vector.load %arg1[%c0, %c0_0] : memref<16x128xbf16, #tpu.memory_space<vmem>>, vector<16x128xbf16>
    %c0_1 = arith.constant 0 : index
    %c0_2 = arith.constant 0 : index
    %1 = vector.load %arg2[%c0_1, %c0_2] : memref<128x256xbf16, #tpu.memory_space<vmem>>, vector<128x256xbf16>
    %cst = arith.constant dense<0.000000e+00> : vector<16x256xf32>
    %2 = tpu.matmul %0, %1, %cst {dimension_numbers = #tpu.dot_dimension_numbers<[1], [0], [0], [1], [0, 0, 1, 1], [], []>} : vector<16x128xbf16>, vector<128x256xbf16>, vector<16x256xf32> -> vector<16x256xf32>
    %c0_3 = arith.constant 0 : index
    %c0_4 = arith.constant 0 : index
    %3 = vector.load %arg3[%c0_3, %c0_4] : memref<1x256xf32, #tpu.memory_space<vmem>>, vector<1x256xf32>
    %4 = vector.broadcast %3 : vector<1x256xf32> to vector<16x256xf32>
    %5 = arith.addf %2, %4 : vector<16x256xf32>
    %6 = vector.extract_strided_slice %5 {offsets = [0, 0], sizes = [16, 128], strides = [1, 1]} : vector<16x256xf32> to vector<16x128xf32>
    %7 = vector.extract_strided_slice %5 {offsets = [0, 128], sizes = [16, 128], strides = [1, 1]} : vector<16x256xf32> to vector<16x128xf32>
    %8 = math.exp %7 : vector<16x128xf32>
    %c0_5 = arith.constant 0 : index
    %c0_6 = arith.constant 0 : index
    %9 = vector.load %arg4[%c0_5, %c0_6] : memref<16x128xf32, #tpu.memory_space<vmem>>, vector<16x128xf32>
    %10 = arith.mulf %8, %9 : vector<16x128xf32>
    %11 = arith.addf %6, %10 : vector<16x128xf32>
    %12 = arith.mulf %9, %9 : vector<16x128xf32>
    %cst_7 = arith.constant -5.000000e-01 : f32
    %13 = vector.broadcast %cst_7 : f32 to vector<16x128xf32>
    %14 = arith.mulf %13, %12 : vector<16x128xf32>
    %15 = arith.subf %14, %7 : vector<16x128xf32>
    %cst_8 = arith.constant 0.918938517 : f32
    %16 = vector.broadcast %cst_8 : f32 to vector<16x128xf32>
    %17 = arith.subf %15, %16 : vector<16x128xf32>
    %c0_9 = arith.constant 0 : index
    %c0_10 = arith.constant 0 : index
    %18 = vector.load %arg5[%c0_9, %c0_10] : memref<16x128xf32, #tpu.memory_space<vmem>>, vector<16x128xf32>
    tpu.vector_store %arg5[%c0_9, %c0_10], %6 {strides = array<i32>} : memref<16x128xf32, #tpu.memory_space<vmem>>, vector<16x128xf32>,
    %c0_11 = arith.constant 0 : index
    %c0_12 = arith.constant 0 : index
    %19 = vector.load %arg6[%c0_11, %c0_12] : memref<16x128xf32, #tpu.memory_space<vmem>>, vector<16x128xf32>
    tpu.vector_store %arg6[%c0_11, %c0_12], %7 {strides = array<i32>} : memref<16x128xf32, #tpu.memory_space<vmem>>, vector<16x128xf32>,
    %c0_13 = arith.constant 0 : index
    %c0_14 = arith.constant 0 : index
    %20 = vector.load %arg7[%c0_13, %c0_14] : memref<16x128xf32, #tpu.memory_space<vmem>>, vector<16x128xf32>
    tpu.vector_store %arg7[%c0_13, %c0_14], %11 {strides = array<i32>} : memref<16x128xf32, #tpu.memory_space<vmem>>, vector<16x128xf32>,
    %c0_15 = arith.constant 0 : index
    %c0_16 = arith.constant 0 : index
    %21 = vector.load %arg8[%c0_15, %c0_16] : memref<16x128xf32, #tpu.memory_space<vmem>>, vector<16x128xf32>
    tpu.vector_store %arg8[%c0_15, %c0_16], %17 {strides = array<i32>} : memref<16x128xf32, #tpu.memory_space<vmem>>, vector<16x128xf32>,
    return
  }
  func.func @transform_0(%arg0: i32) -> (i32, i32) {
    %c0_i32 = arith.constant 0 : i32
    %c0_i32_0 = arith.constant 0 : i32
    return %arg0, %c0_i32 : i32, i32
  }
  func.func @transform_1(%arg0: i32) -> (i32, i32) {
    %c0_i32 = arith.constant 0 : i32
    %c0_i32_0 = arith.constant 0 : i32
    %c0_i32_1 = arith.constant 0 : i32
    return %c0_i32, %c0_i32_0 : i32, i32
  }
  func.func @transform_2(%arg0: i32) -> (i32, i32) {
    %c0_i32 = arith.constant 0 : i32
    %c0_i32_0 = arith.constant 0 : i32
    %c0_i32_1 = arith.constant 0 : i32
    return %c0_i32, %c0_i32_0 : i32, i32
  }
  func.func @transform_3(%arg0: i32) -> (i32, i32) {
    %c0_i32 = arith.constant 0 : i32
    %c0_i32_0 = arith.constant 0 : i32
    return %arg0, %c0_i32 : i32, i32
  }
  func.func @transform_4(%arg0: i32) -> (i32, i32) {
    %c0_i32 = arith.constant 0 : i32
    %c0_i32_0 = arith.constant 0 : i32
    return %arg0, %c0_i32 : i32, i32
  }
  func.func @transform_5(%arg0: i32) -> (i32, i32) {
    %c0_i32 = arith.constant 0 : i32
    %c0_i32_0 = arith.constant 0 : i32
    return %arg0, %c0_i32 : i32, i32
  }
  func.func @transform_6(%arg0: i32) -> (i32, i32) {
    %c0_i32 = arith.constant 0 : i32
    %c0_i32_0 = arith.constant 0 : i32
    return %arg0, %c0_i32 : i32, i32
  }
  func.func @transform_7(%arg0: i32) -> (i32, i32) {
    %c0_i32 = arith.constant 0 : i32
    %c0_i32_0 = arith.constant 0 : i32
    return %arg0, %c0_i32 : i32, i32
  }
}

</mosaic_0001>

<bundles_post_ra>
// kernel: tpu_custom_call.1
= control target key start
LH: loop header
LB: loop body
LE: loop exit
PB: predicated region body
PF: predicated region fallthrough
CT: control target
= control target key end

     0   :  { %13 = vsyncpa [#allocation3], 0  ;;  %s727_s0 = inlined_call_operand.hbm [shape: bf16[16,128], index: 0, kind: input, shape index: {}]   ;;  %s728_s1 = inlined_call_operand.hbm [shape: bf16[128,256], index: 1, kind: input, shape index: {}]   ;;  %s729_s2 = inlined_call_operand.hbm [shape: f32[1,256], index: 2, kind: input, shape index: {}]   ;;  %s730_s3 = inlined_call_operand.hbm [shape: f32[16,128], index: 3, kind: input, shape index: {}]   ;;  %s731_s4 = inlined_call_operand.hbm [shape: f32[16,128], index: 4, kind: output, shape index: {0}]   ;;  %s732_s5 = inlined_call_operand.hbm [shape: f32[16,128], index: 5, kind: output, shape index: {1}]   ;;  %s733_s6 = inlined_call_operand.hbm [shape: f32[16,128], index: 6, kind: output, shape index: {2}]   ;;  %s734_s7 = inlined_call_operand.hbm [shape: f32[16,128], index: 7, kind: output, shape index: {3}]  }
   0x1   :  { %14 = vsyncpa [#allocation6], 0 }
   0x2   :  { %15 = vsyncpa [#allocation9], 0 }
   0x3   :  { %16 = vsyncpa [#allocation4], 0 }
   0x4   :  { %17 = vsyncpa [#allocation12], 0  ;;  %s36_s26 = sshll.u32 %s728_s1, 4  ;;  %s37_s26 = int_to_ptr.hbm [resolvable:$true] %s36_s26 }
   0x5   :  { %18 = vsyncpa [#allocation15], 0  ;;  %s630_s27 = smov [#allocation5]   ;;  %s23_s8 = sshll.u32 %s727_s0, 4  ;;  %s24_s8 = int_to_ptr.hbm [resolvable:$true] %s23_s8 }
   0x6   :  { %s38_s28 = sshll.u32 %s630_s27, 4  ;;  %s631_s9 = smov 128   ;;  %s39_s28 = int_to_ptr.vmem [resolvable:$true] %s38_s28 }
   0x7   :  { %s632_s10 = smov 8   ;;  %s633_s11 = smov [#allocation2]  }
   0x8   :  { %44 = dma.hbm_to_vmem [thread:$0]  %s37_s26, 2048, %s39_s28, [#allocation6], %s631_s9, %s631_s9, %s632_s10  }
   0x9   :  { %s25_s12 = sshll.u32 %s633_s11, 4  ;;  %s634_s1 = smov 64   ;;  %s26_s12 = int_to_ptr.vmem [resolvable:$true] %s25_s12 }
   0xa   :  { %s635_s13 = smov 4   ;;  %s50_s16 = sshll.u32 %s729_s2, 4  ;;  %s51_s16 = int_to_ptr.hbm [resolvable:$true] %s50_s16 }
   0xb   :  { %31 = dma.hbm_to_vmem [thread:$0]  %s24_s8, 128, %s26_s12, [#allocation3], %s634_s1, %s634_s1, %s635_s13  }
   0xc   :  { %s636_s17 = smov [#allocation7]   ;;  %s60_s20 = sshll.u32 %s730_s3, 4  ;;  %s61_s20 = int_to_ptr.hbm [resolvable:$true] %s60_s20 }
   0xd   :  { %s52_s0 = sshll.u32 %s636_s17, 4  ;;  %s637_s21 = smov [#allocation8]   ;;  %s53_s0 = int_to_ptr.vmem [resolvable:$true] %s52_s0 }
   0xe   :  { %55 = dma.hbm_to_vmem [thread:$0]  %s51_s16, 32, %s53_s0, [#allocation6]  }
   0xf   :  { %s62_s22 = sshll.u32 %s637_s21, 4  ;;  %s63_s22 = int_to_ptr.vmem [resolvable:$true] %s62_s22 }
  0x10   :  { %68 = dma.hbm_to_vmem [thread:$0]  %s61_s20, 256, %s63_s22, [#allocation9], %s631_s9, %s631_s9, %s632_s10  }
  0x11   :  { %618 = dma.done.wait [#allocation3], 128  }
  0x12   :  { %619 = vsyncadd [#allocation3], 4294967168 }
  0x13   :  { %620 = dma.done.wait [#allocation6], 2080  }
  0x14   :  { %621 = vsyncadd [#allocation6], 4294965216 }
  0x15   :  { %622 = dma.done.wait [#allocation9], 256  }
  0x16   :  { %623 = vsyncadd [#allocation9], 4294967040  ;;  %v408_v0 = vld [vmem:[#allocation5 + $0x74] sm:$0xf]  ;;  %v387_v1 = vld [vmem:[#allocation5 + $0x78] sm:$0xf0] }
  0x17   :  { %v385_v2 = vld [vmem:[#allocation5 + $0x70] sm:$0xf]  ;;  %v390_v3 = vor.u32 %v408_v0, %v387_v1  ;;  %v409_v4 = vld [vmem:[#allocation5 + $0x74] sm:$0xf0]  ;;  %v406_v5 = vld [vmem:[#allocation5 + $0x64] sm:$0xf] }
  0x18   :  { %v379_v6 = vld [vmem:[#allocation5 + $0x68] sm:$0xf0]  ;;  %v386_v7 = vor.u32 %v409_v4, %v385_v2  ;;  %v377_v8 = vld [vmem:[#allocation5 + $0x60] sm:$0xf]  ;;  %v407_v9 = vld [vmem:[#allocation5 + $0x64] sm:$0xf0] }
  0x19   :  { %209 = vmatpush.bf16.msra.mxu1 %v390_v3  ;;  %v382_v10 = vor.u32 %v406_v5, %v379_v6  ;;  %v378_v11 = vor.u32 %v407_v9, %v377_v8  ;;  %v404_v12 = vld [vmem:[#allocation5 + $0x54] sm:$0xf]  ;;  %v371_v13 = vld [vmem:[#allocation5 + $0x58] sm:$0xf0]  ;;  %v369_v14 = vld [vmem:[#allocation5 + $0x50] sm:$0xf] }
  0x1a   :  { %195 = vmatpush.bf16.msra.mxu0 %v386_v7  ;;  %v405_v15 = vld [vmem:[#allocation5 + $0x54] sm:$0xf0]  ;;  %v374_v16 = vor.u32 %v404_v12, %v371_v13  ;;  %v402_v18 = vld [vmem:[#allocation5 + $0x44] sm:$0xf]  ;;  %v363_v19 = vld [vmem:[#allocation5 + $0x48] sm:$0xf0] }
  0x1b   :  { %v370_v17 = vor.u32 %v405_v15, %v369_v14  ;;  %v361_v20 = vld [vmem:[#allocation5 + $0x40] sm:$0xf]  ;;  %v403_v21 = vld [vmem:[#allocation5 + $0x44] sm:$0xf0]  ;;  %v366_v22 = vor.u32 %v402_v18, %v363_v19  ;;  %v400_v24 = vld [vmem:[#allocation5 + $0x34] sm:$0xf] }
  0x1c   :  { %v362_v23 = vor.u32 %v403_v21, %v361_v20  ;;  %v355_v25 = vld [vmem:[#allocation5 + $0x38] sm:$0xf0]  ;;  %v353_v26 = vld [vmem:[#allocation5 + $0x30] sm:$0xf]  ;;  %v401_v27 = vld [vmem:[#allocation5 + $0x34] sm:$0xf0] }
  0x1d   :  { %210 = vmatpush.bf16.msra.mxu1 %v382_v10  ;;  %v358_v28 = vor.u32 %v400_v24, %v355_v25  ;;  %v354_v29 = vor.u32 %v401_v27, %v353_v26  ;;  %v398_v30 = vld [vmem:[#allocation5 + $0x24] sm:$0xf]  ;;  %v347_v31 = vld [vmem:[#allocation5 + $0x28] sm:$0xf0]  ;;  %v345_v32 = vld [vmem:[#allocation5 + $0x20] sm:$0xf] }
  0x1e   :  { %196 = vmatpush.bf16.msra.mxu0 %v378_v11  ;;  %v399_v33 = vld [vmem:[#allocation5 + $0x24] sm:$0xf0]  ;;  %v350_v34 = vor.u32 %v398_v30, %v347_v31  ;;  %v396_v36 = vld [vmem:[#allocation5 + $0x14] sm:$0xf]  ;;  %v339_v37 = vld [vmem:[#allocation5 + $0x18] sm:$0xf0] }
  0x1f   :  { %v346_v35 = vor.u32 %v399_v33, %v345_v32  ;;  %v337_v38 = vld [vmem:[#allocation5 + $0x10] sm:$0xf]  ;;  %v397_v39 = vld [vmem:[#allocation5 + $0x14] sm:$0xf0]  ;;  %v342_v40 = vor.u32 %v396_v36, %v339_v37  ;;  %v394_v42 = vld [vmem:[#allocation5 + $0x4] sm:$0xf] }
  0x20   :  { %v338_v41 = vor.u32 %v397_v39, %v337_v38  ;;  %v331_v43 = vld [vmem:[#allocation5 + $0x8] sm:$0xf0]  ;;  %v329_v44 = vld [vmem:[#allocation5] sm:$0xf]  ;;  %v395_v45 = vld [vmem:[#allocation5 + $0x4] sm:$0xf0] }
  0x21   :  { %211 = vmatpush.bf16.msra.mxu1 %v374_v16  ;;  %v334_v46 = vor.u32 %v394_v42, %v331_v43  ;;  %v330_v47 = vor.u32 %v395_v45, %v329_v44  ;;  %v393_v48 = vld [vmem:[#allocation2] sm:$0xff]  ;;  %v227_v49 = vld [vmem:[#allocation8] sm:$0xff]  ;;  %v103_v50 = vld [vmem:[#allocation7] sm:$0x3]  ;;  %s638_s2 = smov [#allocation11]   ;;  %s268_s25 = sshll.u32 %s732_s5, 4  ;;  %s269_s25 = int_to_ptr.hbm [resolvable:$true] %s268_s25 }
  0x22   :  { %197 = vmatpush.bf16.msra.mxu0 %v370_v17  ;;  %v233_v51 = vmul.f32 %v227_v49, %v227_v49  ;;  %v106_v52 = vperm.slane %v103_v50, 1  ;;  %v105_v53 = vperm.slane %v103_v50, 0  ;;  %v228_v56 = vld [vmem:[#allocation8 + $0x8] sm:$0xff]  ;;  %s700_s3 = sshll.u32 %s638_s2, 4  ;;  %s639_s26 = smov [#allocation10]   ;;  %s267_s3 = int_to_ptr.vmem [resolvable:$true] %s700_s3 }
  0x23   :  { %v234_v62 = vmul.f32 %v228_v56, %v228_v56  ;;  %s253_s27 = sshll.u32 %s639_s26, 4  ;;  %s255_s30 = sshll.u32 %s731_s4, 4  ;;  %s254_s27 = int_to_ptr.vmem [resolvable:$true] %s253_s27  ;;  %s256_s30 = int_to_ptr.hbm [resolvable:$true] %s255_s30 }
  0x24   :  { %v235_v54 = vmul.f32 -0.5, %v233_v51  ;;  %s640_s8 = smov [#allocation14]   ;;  %s294_s13 = sshll.u32 %s734_s7, 4  ;;  %s295_s13 = int_to_ptr.hbm [resolvable:$true] %s294_s13 }
  0x25   :  { %212 = vmatpush.bf16.msra.mxu1 %v366_v22  ;;  %v236_v0 = vmul.f32 -0.5, %v234_v62  ;;  %s292_s11 = sshll.u32 %s640_s8, 4  ;;  %s641_s4 = smov [#allocation13]   ;;  %s293_s11 = int_to_ptr.vmem [resolvable:$true] %s292_s11 }
  0x26   :  { %198 = vmatpush.bf16.msra.mxu0 %v362_v23  ;;  %s279_s5 = sshll.u32 %s641_s4, 4  ;;  %s281_s15 = sshll.u32 %s733_s6, 4  ;;  %s280_s5 = int_to_ptr.vmem [resolvable:$true] %s279_s5  ;;  %s282_s15 = int_to_ptr.hbm [resolvable:$true] %s281_s15 }
  0x29   :  { %213 = vmatpush.bf16.msra.mxu1 %v358_v28 }
  0x2a   :  { %199 = vmatpush.bf16.msra.mxu0 %v354_v29 }
  0x2d   :  { %214 = vmatpush.bf16.msra.mxu1 %v350_v34 }
  0x2e   :  { %200 = vmatpush.bf16.msra.mxu0 %v346_v35 }
  0x31   :  { %215 = vmatpush.bf16.msra.mxu1 %v342_v40 }
  0x32   :  { %201 = vmatpush.bf16.msra.mxu0 %v338_v41 }
  0x35   :  { %216 = vmatpush.bf16.msra.mxu1 %v334_v46 }
  0x36   :  { %202 = vmatpush.bf16.msra.mxu0 %v330_v47 }
  0x38   :  { %217 = vmatmul.bf16.vlgmr.msra.gmra.mxu1 %v393_v48 }
  0x39   :  { %203 = vmatmul.bf16.vlgmr.msra.gmra.mxu0 %v393_v48 }
  0xb5   :  { %v218_v55 = vpop.f32.mrf.mxu1 }
  0xb6   :  { %v219_v57 = vadd.f32 %v218_v55, %v106_v52  ;;  %v204_v58 = vpop.f32.mrf.mxu0 }
  0xb7   :  { %v205_v59 = vadd.f32 %v204_v58, %v105_v53 }
  0xb8   :  { %v223_v60 = vmul.f32 1.442695, %v219_v57  ;;  %v237_v61 = vsub.f32 %v235_v54, %v219_v57  ;;  %243 = vst [vmem:[#allocation11] sm:$0xff] %v219_v57 }
  0xb9   :  { %241 = vst [vmem:[#allocation10] sm:$0xff] %v205_v59 }
  0xba   :  { %422 = vpow2.f32 %v223_v60  ;;  %v391_v63 = vadd.f32 -0.9189385, %v237_v61 }
  0xbc   :  { %247 = vst [vmem:[#allocation14] sm:$0xff] %v391_v63 }
  0xbd   :  { %v220_v1 = vpop.f32.mrf.mxu1 }
  0xbe   :  { %v221_v2 = vadd.f32 %v220_v1, %v106_v52  ;;  %v206_v3 = vpop.f32.mrf.mxu0 }
  0xbf   :  { %v207_v4 = vadd.f32 %v206_v3, %v105_v53 }
  0xc0   :  { %v423_v5 = vpop.eup %422  ;;  %v225_v6 = vmul.f32 1.442695, %v221_v2  ;;  %v238_v7 = vsub.f32 %v236_v0, %v221_v2  ;;  %244 = vst [vmem:[#allocation11 + $0x8] sm:$0xff] %v221_v2 }
  0xc1   :  { %v229_v8 = vmul.f32 %v423_v5, %v227_v49  ;;  %242 = vst [vmem:[#allocation10 + $0x8] sm:$0xff] %v207_v4  ;;  %274 = dma.vmem_to_hbm [thread:$0]  %s267_s3, 256, %s269_s25, [#allocation12], %s631_s9, %s631_s9, %s632_s10  }
  0xc2   :  { %424 = vpow2.f32 %v225_v6  ;;  %v392_v9 = vadd.f32 -0.9189385, %v238_v7  ;;  %261 = dma.vmem_to_hbm [thread:$0]  %s254_s27, 256, %s256_s30, [#allocation4], %s631_s9, %s631_s9, %s632_s10  }
  0xc3   :  { %v231_v10 = vadd.f32 %v229_v8, %v205_v59 }
  0xc4   :  { %248 = vst [vmem:[#allocation14 + $0x8] sm:$0xff] %v392_v9 }
  0xc5   :  { %245 = vst [vmem:[#allocation13] sm:$0xff] %v231_v10  ;;  %300 = dma.vmem_to_hbm [thread:$0]  %s293_s11, 256, %s295_s13, [#allocation15], %s631_s9, %s631_s9, %s632_s10  }
  0xc8   :  { %v425_v11 = vpop.eup %424 }
  0xc9   :  { %v230_v12 = vmul.f32 %v425_v11, %v228_v56 }
  0xcb   :  { %v232_v13 = vadd.f32 %v230_v12, %v207_v4 }
  0xcd   :  { %246 = vst [vmem:[#allocation13 + $0x8] sm:$0xff] %v232_v13 }
  0xce   :  { %287 = dma.vmem_to_hbm [thread:$0]  %s280_s5, 256, %s282_s15, [#allocation12], %s631_s9, %s631_s9, %s632_s10  }
  0xcf   :  { %624 = dma.done.wait [#allocation4], 256  }
  0xd0   :  { %625 = vsyncadd [#allocation4], 4294967040 }
  0xd1   :  { %626 = dma.done.wait [#allocation12], 512  }
  0xd2   :  { %627 = vsyncadd [#allocation12], 4294966784 }
  0xd3   :  { %628 = dma.done.wait [#allocation15], 256  }
  0xd4   :  { %629 = vsyncadd [#allocation15], 4294967040 }
  0xd5   :  { %317 = vsyncpa [#allocation3], 1 }
  0xd6   :  { %318 = vsyncpa [#allocation6], 1 }
  0xd7   :  { %319 = vsyncpa [#allocation9], 1 }
  0xd8   :  { %320 = vsyncpa [#allocation4], 1 }
  0xd9   :  { %321 = vsyncpa [#allocation12], 1 }
  0xda   :  { %322 = vsyncpa [#allocation15], 1 }

</bundles_post_ra>
